<compile_context>
chip_gen: v6e
topology: v6e:2x2x1
jax: 0.10.0
libtpu: 0.0.40
codegen_flags: <defaults>
</compile_context>

<pallas_src>
import functools

import jax
import jax.numpy as jnp
from jax import lax
from jax.experimental import pallas as pl
from jax.experimental.pallas import tpu as pltpu


def _round_up(a: int, m: int) -> int:
    return ((a + m - 1) // m) * m


# ----------------------------------------------------------------------------
# Fused kernel: embedding lookup + concat + (Linear -> LeakyReLU) x 2
# ----------------------------------------------------------------------------
def _deepdense_kernel(x_ref, tbl_ref, w1e_ref, w1c_ref, b1_ref, w2_ref, b2_ref,
                      o_ref, *, cat_positions, vocab_offsets, cont_positions,
                      total_vocab):
    x = x_ref[...]                                        # (TB, n_cols) f32
    tb = x.shape[0]

    # -- embedding lookups: one-hot over the concatenated vocab space, then a
    #    single matmul against the block-diagonal table == concat of lookups.
    lanes = lax.broadcasted_iota(jnp.int32, (tb, total_vocab), 1)
    onehot = jnp.zeros((tb, total_vocab), jnp.float32)
    for col, off in zip(cat_positions, vocab_offsets):    # static, unrolled
        idx = x[:, col:col + 1].astype(jnp.int32) + off   # (TB, 1) int32
        onehot = onehot + (lanes == idx).astype(jnp.float32)
    emb = jnp.dot(onehot.astype(jnp.bfloat16), tbl_ref[...],
                  preferred_element_type=jnp.float32)     # (TB, emb_dim) f32

    # -- dense_layer_0: Linear + LeakyReLU(0.01)
    #    x @ W1 == emb @ W1[:emb_dim] + cont @ W1[emb_dim:]   (concat folded)
    h = jnp.dot(emb.astype(jnp.bfloat16), w1e_ref[...],
                preferred_element_type=jnp.float32)       # (TB, H1) f32
    w1c = w1c_ref[...]                                    # (n_cont, H1) f32
    for j, col in enumerate(cont_positions):              # static, unrolled
        h = h + x[:, col:col + 1] * w1c[j:j + 1, :]       # f32 VPU FMA
    h = h + b1_ref[...]
    h = jnp.maximum(h, 0.01 * h)                          # LeakyReLU

    # -- dense_layer_1: Linear + LeakyReLU(0.01)
    y = jnp.dot(h.astype(jnp.bfloat16), w2_ref[...],
                preferred_element_type=jnp.float32)       # (TB, H2_pad) f32
    y = y + b2_ref[...]
    y = jnp.maximum(y, 0.01 * y)                          # LeakyReLU
    o_ref[...] = y.astype(o_ref.dtype)


def deepdense_forward(X, tbl_bf16, w1e_bf16, w1c_f32, b1, w2p_bf16, b2p, *,
                      cat_positions, vocab_offsets, cont_positions, out_dim):
    B, n_cols = X.shape
    total_vocab = tbl_bf16.shape[0]
    H2_pad = w2p_bf16.shape[1]

    # Batch tiling: pick a sublane-aligned tile; pad the batch to a multiple.
    TB = min(512, _round_up(B, 8))
    B_pad = _round_up(B, TB)
    Xf = X.astype(jnp.float32)
    if B_pad != B:
        Xf = jnp.pad(Xf, ((0, B_pad - B), (0, 0)))        # pad rows -> index 0

    kernel = functools.partial(
        _deepdense_kernel,
        cat_positions=tuple(cat_positions),
        vocab_offsets=tuple(vocab_offsets),
        cont_positions=tuple(cont_positions),
        total_vocab=total_vocab,
    )

    def resident(arr):  # weights / biases: same block at every grid step
        return pl.BlockSpec(arr.shape, lambda i: (0, 0))

    out = pl.pallas_call(
        kernel,
        out_shape=jax.ShapeDtypeStruct((B_pad, H2_pad), jnp.float32),
        grid=(B_pad // TB,),
        in_specs=[
            pl.BlockSpec((TB, n_cols), lambda i: (i, 0)),   # streamed X tile
            resident(tbl_bf16),
            resident(w1e_bf16),
            resident(w1c_f32),
            resident(b1),
            resident(w2p_bf16),
            resident(b2p),
        ],
        out_specs=pl.BlockSpec((TB, H2_pad), lambda i: (i, 0)),
        compiler_params=pltpu.CompilerParams(
            dimension_semantics=("parallel",)),
    )(Xf, tbl_bf16, w1e_bf16, w1c_f32, b1, w2p_bf16, b2p)

    return out[:B, :out_dim]


# ----------------------------------------------------------------------------
# DeepDense module in JAX (parameters + fused Pallas forward)
# ----------------------------------------------------------------------------
class DeepDenseJAX:
    """JAX/Pallas port of pytorch_widedeep.models.DeepDense (2 hidden layers)."""

    def __init__(self, key, deep_column_idx, hidden_layers,
                 embed_input=None, continuous_cols=None):
        if embed_input is None:
            # TODO(synk): continuous-only DeepDense (no embeddings) is not wired
            # into the fused kernel.
            raise NotImplementedError("embed_input is required by this kernel")
        assert len(hidden_layers) == 2, "this script fuses exactly two dense layers"

        self.deep_column_idx = dict(deep_column_idx)
        self.embed_input = list(embed_input)
        self.continuous_cols = list(continuous_cols) if continuous_cols else []

        n_emb = len(self.embed_input)
        keys = jax.random.split(key, n_emb + 2)

        # Embedding tables (nn.Embedding init: N(0, 1)), f32 masters.
        self.embed_tables = {}
        for k, (col, val, dim) in zip(keys[:n_emb], self.embed_input):
            self.embed_tables[col] = jax.random.normal(k, (val, dim), jnp.float32)

        emb_dim_total = sum(dim for _, _, dim in self.embed_input)
        n_cont = len(self.continuous_cols)
        input_dim = emb_dim_total + n_cont
        H1, H2 = hidden_layers
        self.output_dim = H2

        # Linear params (nn.Linear init: U(-1/sqrt(fan_in), 1/sqrt(fan_in))).
        def linear_init(k, fan_in, fan_out):
            kw, kb = jax.random.split(k)
            bound = 1.0 / (fan_in ** 0.5)
            w = jax.random.uniform(kw, (fan_in, fan_out), jnp.float32, -bound, bound)
            b = jax.random.uniform(kb, (1, fan_out), jnp.float32, -bound, bound)
            return w, b

        w1, b1 = linear_init(keys[n_emb], input_dim, H1)
        w2, b2 = linear_init(keys[n_emb + 1], H1, H2)

        # ---- derived kernel operands ----------------------------------------
        # Block-diagonal combined embedding table: one MXU matmul reproduces the
        # concatenation of all per-column lookups.
        total_vocab = sum(val for _, val, _ in self.embed_input)
        tbl = jnp.zeros((total_vocab, emb_dim_total), jnp.float32)
        self._cat_positions, self._vocab_offsets = [], []
        voff = doff = 0
        for col, val, dim in self.embed_input:
            tbl = tbl.at[voff:voff + val, doff:doff + dim].set(self.embed_tables[col])
            self._cat_positions.append(self.deep_column_idx[col])
            self._vocab_offsets.append(voff)
            voff += val
            doff += dim
        self._cont_positions = [self.deep_column_idx[c] for c in self.continuous_cols]

        H2_pad = _round_up(H2, 128)
        self._tbl_bf16 = tbl.astype(jnp.bfloat16)
        self._w1e_bf16 = w1[:emb_dim_total, :].astype(jnp.bfloat16)
        if n_cont > 0:
            self._w1c = w1[emb_dim_total:, :]                        # f32
        else:
            self._w1c = jnp.zeros((1, H1), jnp.float32)              # unused dummy
        self.b1 = b1                                                 # (1, H1) f32
        self._w2p_bf16 = jnp.pad(w2, ((0, 0), (0, H2_pad - H2))).astype(jnp.bfloat16)
        self._b2p = jnp.pad(b2, ((0, 0), (0, H2_pad - H2)))          # (1, H2_pad) f32

    def __call__(self, X):
        return deepdense_forward(
            X, self._tbl_bf16, self._w1e_bf16, self._w1c, self.b1,
            self._w2p_bf16, self._b2p,
            cat_positions=self._cat_positions,
            vocab_offsets=self._vocab_offsets,
            cont_positions=self._cont_positions,
            out_dim=self.output_dim)


# ----------------------------------------------------------------------------
# Pure-JAX f32 reference (same bf16-stored parameters, original op order)
# ----------------------------------------------------------------------------
def _reference(model, X):
    feats = []
    tbl = model._tbl_bf16.astype(jnp.float32)
    voff = doff = 0
    for col, val, dim in model.embed_input:
        idx = X[:, model.deep_column_idx[col]].astype(jnp.int32)
        feats.append(jnp.take(tbl[voff:voff + val, doff:doff + dim], idx, axis=0))
        voff += val
        doff += dim
    if model.continuous_cols:
        cont_idx = jnp.array([model.deep_column_idx[c] for c in model.continuous_cols])
        feats.append(X[:, cont_idx].astype(jnp.float32))
    x = jnp.concatenate(feats, axis=1)

    w1 = jnp.concatenate(
        [model._w1e_bf16.astype(jnp.float32), model._w1c], axis=0)[:x.shape[1], :]
    h = x @ w1 + model.b1
    h = jnp.where(h > 0, h, 0.01 * h)
    w2 = model._w2p_bf16.astype(jnp.float32)[:, :model.output_dim]
    b2 = model._b2p[:, :model.output_dim]
    y = h @ w2 + b2
    y = jnp.where(y > 0, y, 0.01 * y)
    return y


if __name__ == "__main__":
    key = jax.random.PRNGKey(0)
    k_x, k_cont, k_model = jax.random.split(key, 3)

    # Config mirroring the module docstring example, plus one continuous column.
    colnames = ["a", "b", "c", "d", "e"]
    embed_input = [(u, 4, 8) for u in colnames[:4]]      # 4 cat cols, vocab 4, dim 8
    continuous_cols = ["e"]
    deep_column_idx = {k: v for v, k in enumerate(colnames)}
    hidden_layers = [64, 32]

    batch = 8
    cat = jax.random.randint(k_x, (batch, 4), 0, 4).astype(jnp.float32)
    cont = jax.random.uniform(k_cont, (batch, 1), jnp.float32)
    X = jnp.concatenate([cat, cont], axis=1)             # (8, 5)

    model = DeepDenseJAX(k_model, deep_column_idx, hidden_layers,
                         embed_input=embed_input, continuous_cols=continuous_cols)

    out = jax.block_until_ready(model(X))
    ref = _reference(model, X)

    assert out.shape == (batch, hidden_layers[-1]), out.shape
    assert jnp.allclose(out, ref, atol=1e-2, rtol=1e-2), \
        float(jnp.max(jnp.abs(out - ref)))

    print("KERNEL_OK")
</pallas_src>

<mosaic_0001>
module attributes {stable_mosaic.version = 11 : i64} {
  func.func @_deepdense_kernel(%arg0: i32, %arg1: memref<8x5xf32, #tpu.memory_space<vmem>>, %arg2: memref<16x32xbf16, #tpu.memory_space<vmem>>, %arg3: memref<32x64xbf16, #tpu.memory_space<vmem>>, %arg4: memref<1x64xf32, #tpu.memory_space<vmem>>, %arg5: memref<1x64xf32, #tpu.memory_space<vmem>>, %arg6: memref<64x128xbf16, #tpu.memory_space<vmem>>, %arg7: memref<1x128xf32, #tpu.memory_space<vmem>>, %arg8: memref<8x128xf32, #tpu.memory_space<vmem>>) attributes {dimension_semantics = [#tpu.dimension_semantics<parallel>], iteration_bounds = array<i64: 1>, scalar_prefetch = 0 : i64, scratch_operands = 0 : i64, tpu.core_type = #tpu.core_type<tc>, window_params = [{transform_indices = @transform_0, window_bounds = array<i64: 8, 5>}, {pipeline_mode = #tpu.pipeline_mode<synchronous>, transform_indices = @transform_1, window_bounds = array<i64: 16, 32>}, {pipeline_mode = #tpu.pipeline_mode<synchronous>, transform_indices = @transform_2, window_bounds = array<i64: 32, 64>}, {pipeline_mode = #tpu.pipeline_mode<synchronous>, transform_indices = @transform_3, window_bounds = array<i64: 1, 64>}, {pipeline_mode = #tpu.pipeline_mode<synchronous>, transform_indices = @transform_4, window_bounds = array<i64: 1, 64>}, {pipeline_mode = #tpu.pipeline_mode<synchronous>, transform_indices = @transform_5, window_bounds = array<i64: 64, 128>}, {pipeline_mode = #tpu.pipeline_mode<synchronous>, transform_indices = @transform_6, window_bounds = array<i64: 1, 128>}, {transform_indices = @transform_7, window_bounds = array<i64: 8, 128>}]} {
    %c0 = arith.constant 0 : index
    %c0_0 = arith.constant 0 : index
    %0 = vector.load %arg1[%c0, %c0_0] : memref<8x5xf32, #tpu.memory_space<vmem>>, vector<8x5xf32>
    %1 = tpu.iota {dimensions = array<i32: 1>} : vector<8x16xi32>
    %cst = arith.constant 0.000000e+00 : f32
    %2 = vector.broadcast %cst : f32 to vector<8x16xf32>
    %3 = vector.extract_strided_slice %0 {offsets = [0, 0], sizes = [8, 1], strides = [1, 1]} : vector<8x5xf32> to vector<8x1xf32>
    %4 = arith.fptosi %3 : vector<8x1xf32> to vector<8x1xi32>
    %c0_i32 = arith.constant 0 : i32
    %5 = vector.broadcast %c0_i32 : i32 to vector<8x1xi32>
    %6 = arith.addi %4, %5 : vector<8x1xi32>
    %7 = vector.broadcast %6 : vector<8x1xi32> to vector<8x16xi32>
    %8 = arith.cmpi eq, %1, %7 : vector<8x16xi32>
    %9 = arith.extui %8 : vector<8x16xi1> to vector<8x16xi32>
    %10 = arith.sitofp %9 : vector<8x16xi32> to vector<8x16xf32>
    %11 = arith.addf %2, %10 : vector<8x16xf32>
    %12 = vector.extract_strided_slice %0 {offsets = [0, 1], sizes = [8, 1], strides = [1, 1]} : vector<8x5xf32> to vector<8x1xf32>
    %13 = arith.fptosi %12 : vector<8x1xf32> to vector<8x1xi32>
    %c4_i32 = arith.constant 4 : i32
    %14 = vector.broadcast %c4_i32 : i32 to vector<8x1xi32>
    %15 = arith.addi %13, %14 : vector<8x1xi32>
    %16 = vector.broadcast %15 : vector<8x1xi32> to vector<8x16xi32>
    %17 = arith.cmpi eq, %1, %16 : vector<8x16xi32>
    %18 = arith.extui %17 : vector<8x16xi1> to vector<8x16xi32>
    %19 = arith.sitofp %18 : vector<8x16xi32> to vector<8x16xf32>
    %20 = arith.addf %11, %19 : vector<8x16xf32>
    %21 = vector.extract_strided_slice %0 {offsets = [0, 2], sizes = [8, 1], strides = [1, 1]} : vector<8x5xf32> to vector<8x1xf32>
    %22 = arith.fptosi %21 : vector<8x1xf32> to vector<8x1xi32>
    %c8_i32 = arith.constant 8 : i32
    %23 = vector.broadcast %c8_i32 : i32 to vector<8x1xi32>
    %24 = arith.addi %22, %23 : vector<8x1xi32>
    %25 = vector.broadcast %24 : vector<8x1xi32> to vector<8x16xi32>
    %26 = arith.cmpi eq, %1, %25 : vector<8x16xi32>
    %27 = arith.extui %26 : vector<8x16xi1> to vector<8x16xi32>
    %28 = arith.sitofp %27 : vector<8x16xi32> to vector<8x16xf32>
    %29 = arith.addf %20, %28 : vector<8x16xf32>
    %30 = vector.extract_strided_slice %0 {offsets = [0, 3], sizes = [8, 1], strides = [1, 1]} : vector<8x5xf32> to vector<8x1xf32>
    %31 = arith.fptosi %30 : vector<8x1xf32> to vector<8x1xi32>
    %c12_i32 = arith.constant 12 : i32
    %32 = vector.broadcast %c12_i32 : i32 to vector<8x1xi32>
    %33 = arith.addi %31, %32 : vector<8x1xi32>
    %34 = vector.broadcast %33 : vector<8x1xi32> to vector<8x16xi32>
    %35 = arith.cmpi eq, %1, %34 : vector<8x16xi32>
    %36 = arith.extui %35 : vector<8x16xi1> to vector<8x16xi32>
    %37 = arith.sitofp %36 : vector<8x16xi32> to vector<8x16xf32>
    %38 = arith.addf %29, %37 : vector<8x16xf32>
    %39 = arith.truncf %38 : vector<8x16xf32> to vector<8x16xbf16>
    %c0_1 = arith.constant 0 : index
    %c0_2 = arith.constant 0 : index
    %40 = vector.load %arg2[%c0_1, %c0_2] : memref<16x32xbf16, #tpu.memory_space<vmem>>, vector<16x32xbf16>
    %cst_3 = arith.constant dense<0.000000e+00> : vector<8x32xf32>
    %41 = tpu.matmul %39, %40, %cst_3 {dimension_numbers = #tpu.dot_dimension_numbers<[1], [0], [0], [1], [0, 0, 1, 1], [], []>} : vector<8x16xbf16>, vector<16x32xbf16>, vector<8x32xf32> -> vector<8x32xf32>
    %42 = arith.truncf %41 : vector<8x32xf32> to vector<8x32xbf16>
    %c0_4 = arith.constant 0 : index
    %c0_5 = arith.constant 0 : index
    %43 = vector.load %arg3[%c0_4, %c0_5] : memref<32x64xbf16, #tpu.memory_space<vmem>>, vector<32x64xbf16>
    %cst_6 = arith.constant dense<0.000000e+00> : vector<8x64xf32>
    %44 = tpu.matmul %42, %43, %cst_6 {dimension_numbers = #tpu.dot_dimension_numbers<[1], [0], [0], [1], [0, 0, 1, 1], [], []>} : vector<8x32xbf16>, vector<32x64xbf16>, vector<8x64xf32> -> vector<8x64xf32>
    %c0_7 = arith.constant 0 : index
    %c0_8 = arith.constant 0 : index
    %45 = vector.load %arg4[%c0_7, %c0_8] : memref<1x64xf32, #tpu.memory_space<vmem>>, vector<1x64xf32>
    %46 = vector.extract_strided_slice %0 {offsets = [0, 4], sizes = [8, 1], strides = [1, 1]} : vector<8x5xf32> to vector<8x1xf32>
    %47 = vector.broadcast %46 : vector<8x1xf32> to vector<8x64xf32>
    %48 = vector.broadcast %45 : vector<1x64xf32> to vector<8x64xf32>
    %49 = arith.mulf %47, %48 : vector<8x64xf32>
    %50 = arith.addf %44, %49 : vector<8x64xf32>
    %c0_9 = arith.constant 0 : index
    %c0_10 = arith.constant 0 : index
    %51 = vector.load %arg5[%c0_9, %c0_10] : memref<1x64xf32, #tpu.memory_space<vmem>>, vector<1x64xf32>
    %52 = vector.broadcast %51 : vector<1x64xf32> to vector<8x64xf32>
    %53 = arith.addf %50, %52 : vector<8x64xf32>
    %cst_11 = arith.constant 0.00999999977 : f32
    %54 = vector.broadcast %cst_11 : f32 to vector<8x64xf32>
    %55 = arith.mulf %54, %53 : vector<8x64xf32>
    %56 = arith.maximumf %53, %55 : vector<8x64xf32>
    %57 = arith.truncf %56 : vector<8x64xf32> to vector<8x64xbf16>
    %c0_12 = arith.constant 0 : index
    %c0_13 = arith.constant 0 : index
    %58 = vector.load %arg6[%c0_12, %c0_13] : memref<64x128xbf16, #tpu.memory_space<vmem>>, vector<64x128xbf16>
    %cst_14 = arith.constant dense<0.000000e+00> : vector<8x128xf32>
    %59 = tpu.matmul %57, %58, %cst_14 {dimension_numbers = #tpu.dot_dimension_numbers<[1], [0], [0], [1], [0, 0, 1, 1], [], []>} : vector<8x64xbf16>, vector<64x128xbf16>, vector<8x128xf32> -> vector<8x128xf32>
    %c0_15 = arith.constant 0 : index
    %c0_16 = arith.constant 0 : index
    %60 = vector.load %arg7[%c0_15, %c0_16] : memref<1x128xf32, #tpu.memory_space<vmem>>, vector<1x128xf32>
    %61 = vector.broadcast %60 : vector<1x128xf32> to vector<8x128xf32>
    %62 = arith.addf %59, %61 : vector<8x128xf32>
    %cst_17 = arith.constant 0.00999999977 : f32
    %63 = vector.broadcast %cst_17 : f32 to vector<8x128xf32>
    %64 = arith.mulf %63, %62 : vector<8x128xf32>
    %65 = arith.maximumf %62, %64 : vector<8x128xf32>
    %c0_18 = arith.constant 0 : index
    %c0_19 = arith.constant 0 : index
    %66 = vector.load %arg8[%c0_18, %c0_19] : memref<8x128xf32, #tpu.memory_space<vmem>>, vector<8x128xf32>
    tpu.vector_store %arg8[%c0_18, %c0_19], %65 {strides = array<i32>} : memref<8x128xf32, #tpu.memory_space<vmem>>, vector<8x128xf32>,
    return
  }
  func.func @transform_0(%arg0: i32) -> (i32, i32) {
    %c0_i32 = arith.constant 0 : i32
    %c0_i32_0 = arith.constant 0 : i32
    return %arg0, %c0_i32 : i32, i32
  }
  func.func @transform_1(%arg0: i32) -> (i32, i32) {
    %c0_i32 = arith.constant 0 : i32
    %c0_i32_0 = arith.constant 0 : i32
    %c0_i32_1 = arith.constant 0 : i32
    return %c0_i32, %c0_i32_0 : i32, i32
  }
  func.func @transform_2(%arg0: i32) -> (i32, i32) {
    %c0_i32 = arith.constant 0 : i32
    %c0_i32_0 = arith.constant 0 : i32
    %c0_i32_1 = arith.constant 0 : i32
    return %c0_i32, %c0_i32_0 : i32, i32
  }
  func.func @transform_3(%arg0: i32) -> (i32, i32) {
    %c0_i32 = arith.constant 0 : i32
    %c0_i32_0 = arith.constant 0 : i32
    %c0_i32_1 = arith.constant 0 : i32
    return %c0_i32, %c0_i32_0 : i32, i32
  }
  func.func @transform_4(%arg0: i32) -> (i32, i32) {
    %c0_i32 = arith.constant 0 : i32
    %c0_i32_0 = arith.constant 0 : i32
    %c0_i32_1 = arith.constant 0 : i32
    return %c0_i32, %c0_i32_0 : i32, i32
  }
  func.func @transform_5(%arg0: i32) -> (i32, i32) {
    %c0_i32 = arith.constant 0 : i32
    %c0_i32_0 = arith.constant 0 : i32
    %c0_i32_1 = arith.constant 0 : i32
    return %c0_i32, %c0_i32_0 : i32, i32
  }
  func.func @transform_6(%arg0: i32) -> (i32, i32) {
    %c0_i32 = arith.constant 0 : i32
    %c0_i32_0 = arith.constant 0 : i32
    %c0_i32_1 = arith.constant 0 : i32
    return %c0_i32, %c0_i32_0 : i32, i32
  }
  func.func @transform_7(%arg0: i32) -> (i32, i32) {
    %c0_i32 = arith.constant 0 : i32
    %c0_i32_0 = arith.constant 0 : i32
    return %arg0, %c0_i32 : i32, i32
  }
}

</mosaic_0001>

<bundles_post_ra>
// kernel: tpu_custom_call.1
= control target key start
LH: loop header
LB: loop body
LE: loop exit
PB: predicated region body
PF: predicated region fallthrough
CT: control target
= control target key end

     0   :  { %12 = vsyncpa [#allocation3], 0  ;;  %s651_s0 = inlined_call_operand.hbm [shape: f32[8,5], index: 0, kind: input, shape index: {}]   ;;  %s652_s1 = inlined_call_operand.hbm [shape: bf16[16,32], index: 1, kind: input, shape index: {}]   ;;  %s653_s2 = inlined_call_operand.hbm [shape: bf16[32,64], index: 2, kind: input, shape index: {}]   ;;  %s654_s3 = inlined_call_operand.vmem [shape: f32[1,64], index: 3, kind: input, shape index: {}]   ;;  %s655_s4 = inlined_call_operand.vmem [shape: f32[1,64], index: 4, kind: input, shape index: {}]   ;;  %s656_s5 = inlined_call_operand.hbm [shape: bf16[64,128], index: 5, kind: input, shape index: {}]   ;;  %s657_s6 = inlined_call_operand.vmem [shape: f32[1,128], index: 6, kind: input, shape index: {}]   ;;  %s658_s7 = inlined_call_operand.hbm [shape: f32[8,128], index: 7, kind: output, shape index: {}]  }
   0x1   :  { %13 = vsyncpa [#allocation6], 0 }
   0x2   :  { %14 = vsyncpa [#allocation9], 0 }
   0x3   :  { %15 = vsyncpa [#allocation4], 0  ;;  %s547_s24 = smov [#allocation5]  }
   0x4   :  { %s31_s25 = sshll.u32 %s547_s24, 4  ;;  %s32_s25 = int_to_ptr.vmem [resolvable:$true] %s31_s25 }
   0x5   :  { %s447_s26 = scalar_lea.vmem %s32_s25, 128  ;;  %p452_p1 = scmp.lt.s32.totalorder %s32_s25, %s32_s25 }
   0x6   :  { %p448_p0 = scmp.ne.s32.totalorder %s32_s25, %s447_s26  ;;  %p453_p2 = scmp.lt.s32.totalorder %s447_s26, %s447_s26 }
   0x8   :  { %p454_p3 = por %p453_p2, %p452_p1 }
   0xa   :  { %p455_p4 = pnand %p454_p3, %p448_p0 }
   0xc   :  { %458 = shalt.err (!%p455_p4)
}
   0xd   :  { %s548_s27 = smov 64   ;;  %s549_s28 = smov 4  }
   0xe   :  { %37 = dma.hbm_to_vmem [thread:$0]  %s652_s1, 128, %s32_s25, [#allocation6], %s548_s27, %s548_s27, %s549_s28  }
   0xf   :  { %s550_s8 = smov [#allocation2]   ;;  %s551_s10 = smov [#allocation7]  }
  0x10   :  { %s22_s9 = sshll.u32 %s550_s8, 4  ;;  %s43_s11 = sshll.u32 %s551_s10, 4  ;;  %s23_s9 = int_to_ptr.vmem [resolvable:$true] %s22_s9  ;;  %s44_s11 = int_to_ptr.vmem [resolvable:$true] %s43_s11 }
  0x11   :  { %s467_s12 = scalar_lea.vmem %s23_s9, 128  ;;  %p472_p6 = scmp.lt.s32.totalorder %s23_s9, %s23_s9 }
  0x12   :  { %p468_p5 = scmp.ne.s32.totalorder %s23_s9, %s467_s12  ;;  %p473_p7 = scmp.lt.s32.totalorder %s467_s12, %s467_s12 }
  0x14   :  { %p474_p8 = por %p473_p7, %p472_p6 }
  0x16   :  { %p475_p9 = pnand %p474_p8, %p468_p5 }
  0x18   :  { %478 = shalt.err (!%p475_p9)
}
  0x19   :  { %25 = dma.hbm_to_vmem [thread:$0]  %s651_s0, 128, %s23_s9, [#allocation3]  }
  0x1a   :  { %s487_s15 = scalar_lea.vmem %s44_s11, 256  ;;  %p492_p11 = scmp.lt.s32.totalorder %s44_s11, %s44_s11 }
  0x1b   :  { %p488_p10 = scmp.ne.s32.totalorder %s44_s11, %s487_s15  ;;  %p493_p12 = scmp.lt.s32.totalorder %s487_s15, %s487_s15 }
  0x1d   :  { %p494_p13 = por %p493_p12, %p492_p11 }
  0x1f   :  { %p495_p0 = pnand %p494_p13, %p488_p10 }
  0x21   :  { %498 = shalt.err (!%p495_p0)
}
  0x22   :  { %49 = dma.hbm_to_vmem [thread:$0]  %s653_s2, 256, %s44_s11, [#allocation6], %s548_s27, %s548_s27, %s549_s28  }
  0x23   :  { %s552_s17 = smov [#allocation8]  }
  0x24   :  { %s59_s18 = sshll.u32 %s552_s17, 4  ;;  %s60_s18 = int_to_ptr.vmem [resolvable:$true] %s59_s18 }
  0x25   :  { %s507_s19 = scalar_lea.vmem %s60_s18, 512  ;;  %p512_p2 = scmp.lt.s32.totalorder %s60_s18, %s60_s18 }
  0x26   :  { %p508_p1 = scmp.ne.s32.totalorder %s60_s18, %s507_s19  ;;  %p513_p3 = scmp.lt.s32.totalorder %s507_s19, %s507_s19 }
  0x28   :  { %p514_p4 = por %p513_p3, %p512_p2 }
  0x2a   :  { %p515_p5 = pnand %p514_p4, %p508_p1 }
  0x2c   :  { %518 = shalt.err (!%p515_p5)
}
  0x2d   :  { %65 = dma.hbm_to_vmem [thread:$0]  %s656_s5, 512, %s60_s18, [#allocation9], %s548_s27, %s548_s27, %s549_s28  }
  0x2e   :  { %539 = dma.done.wait [#allocation3], 128  }
  0x2f   :  { %540 = vsyncadd [#allocation3], 4294967168 }
  0x30   :  { %541 = dma.done.wait [#allocation6], 384  }
  0x31   :  { %542 = vsyncadd [#allocation6], 4294966912 }
  0x32   :  { %543 = dma.done.wait [#allocation9], 512  }
  0x33   :  { %544 = vsyncadd [#allocation9], 4294966784  ;;  %v553_v0 = vmov 0   ;;  %v554_v1 = vmov 2   ;;  %v555_v2 = vmov 0.0   ;;  %v81_v3 = vld [vmem:[#allocation2] sm:$0xff]  ;;  %v82_v12 = vlaneseq }
  0x34   :  { %426 = vset.pattern.permute.xlu0 %v553_v0  ;;  %428 = vset.pattern.permute.xlu1 %v554_v1  ;;  %v410_v4 = vtrunc.f32 %v81_v3  ;;  %v556_v9 = vmov 1   ;;  %v557_v10 = vmov 3   ;;  %v432_v11 = vld [vmem:[#allocation5] sm:$0xff]   ;;  %vm558_vm0 = vmmov 0   ;;  %v433_v25 = vld [vmem:[#allocation7 + $0x8] sm:$0xff]   ;;  %v434_v27 = vld [vmem:[#allocation7] sm:$0xff]  }
  0x35   :  { %384 = vmatprep.subr.bf16.mxu1 %v555_v2  ;;  %398 = vmatprep.subr.bf16.mxu0 %v555_v2  ;;  %v83_v13 = vand.u32 127, %v82_v12  ;;  %vm125_vm5 = vcmask 130048   ;;  %v435_v28 = vld [vmem:[#allocation8 + $0x18] sm:$0xff]   ;;  %v559_v29 = vmov 4   ;;  %vm199_vm6 = vcmask 261120   ;;  %v436_v35 = vld [vmem:[#allocation8 + $0x10] sm:$0xff]  }
  0x36   :  { %v411_v5 = vcvt.f32.s32 %v410_v4  ;;  %385 = vmatpush3.bf16.msra.mxu1 %v432_v11  ;;  %386 = vmatprep.mubr.msk.bf16.mxu1 %vm558_vm0, %v555_v2  ;;  %v437_v36 = vld [vmem:[#allocation8 + $0x8] sm:$0xff]   ;;  %v438_v37 = vld [vmem:[#allocation8] sm:$0xff]   ;;  %vm293_vm7 = vcmask 523264  }
  0x37   :  { %390 = vmatprep.subr.bf16.mxu1 %v555_v2  ;;  %406 = vmatprep.mubr.msk.bf16.mxu0 %vm558_vm0, %v555_v2  ;;  %v363_v38 = vld [vmem:[%s654_s3] ss:$0 sm:$0xff]  ;;  %s560_s3 = smov [#allocation10]  }
  0x38   :  { %86 = vperm.xlu0 %426, %v411_v5   ;;  %v100_v6 = vadd.s32 8, %v411_v5  ;;  %v92_v7 = vadd.s32 4, %v411_v5  ;;  %v108_v8 = vadd.s32 12, %v411_v5  ;;  %399 = vmatpush3.bf16.msra.mxu0 %v435_v28  ;;  %v367_v42 = vld [vmem:[%s655_s4] ss:$0 sm:$0xff]  ;;  %s346_s25 = sshll.u32 %s560_s3, 4  ;;  %s347_s25 = int_to_ptr.vmem [resolvable:$true] %s346_s25 }
  0x39   :  { %400 = vmatprep.subr.bf16.mxu0 %v555_v2  ;;  %v368_v51 = vld [vmem:[%s657_s6] ss:$0 sm:$0xff]  ;;  %s519_s4 = scalar_lea.vmem %s347_s25, 128  ;;  %p524_p7 = scmp.lt.s32.totalorder %s347_s25, %s347_s25 }
  0x3a   :  { %102 = vperm.xlu1 %428, %v100_v6   ;;  %p520_p6 = scmp.ne.s32.totalorder %s347_s25, %s519_s4  ;;  %p525_p8 = scmp.lt.s32.totalorder %s519_s4, %s519_s4 }
  0x3c   :  { %427 = vset.pattern.permute.xlu0 %v556_v9  ;;  %401 = vmatpush3.bf16.msra.mxu0 %v436_v35  ;;  %p526_p9 = por %p525_p8, %p524_p7 }
  0x3d   :  { %94 = vperm.xlu0 %427, %v92_v7   ;;  %402 = vmatprep.subr.bf16.mxu0 %v555_v2 }
  0x3e   :  { %429 = vset.pattern.permute.xlu1 %v557_v10  ;;  %p527_p10 = pnand %p526_p9, %p520_p6 }
  0x3f   :  { %110 = vperm.xlu1 %429, %v108_v8  }
  0x40   :  { %403 = vmatpush3.bf16.msra.mxu0 %v437_v36 }
  0x41   :  { %431 = vset.pattern.permute.xlu0 %v559_v29  ;;  %404 = vmatprep.subr.bf16.mxu0 %v555_v2 }
  0x43   :  { %430 = vset.pattern.permute.xlu1 %v559_v29 }
  0x44   :  { %177 = vperm.xlu1 %430, %v81_v3   ;;  %405 = vmatpush3.bf16.msra.mxu0 %v438_v37 }
  0xb3   :  { %v87_v14 = vpop.permute.xlu0 %86 }
  0xb4   :  { %vm88_vm1 = vcmp.eq.s32.totalorder %v83_v13, %v87_v14 }
  0xb5   :  { %v103_v15 = vpop.permute.xlu1 %102  ;;  %v357_v17 = vsel %vm88_vm1, 1.0, %v555_v2 }
  0xb6   :  { %vm104_vm2 = vcmp.eq.s32.totalorder %v83_v13, %v103_v15 }
  0xb7   :  { %v359_v21 = vsel %vm104_vm2, 1.0, %v555_v2 }
  0xb8   :  { %v95_v16 = vpop.permute.xlu0 %94 }
  0xb9   :  { %vm96_vm3 = vcmp.eq.s32.totalorder %v83_v13, %v95_v16 }
  0xba   :  { %v358_v18 = vsel %vm96_vm3, 1.0, %v555_v2  ;;  %v111_v19 = vpop.permute.xlu1 %110 }
  0xbb   :  { %v99_v20 = vadd.f32 %v358_v18, %v357_v17  ;;  %vm112_vm4 = vcmp.eq.s32.totalorder %v83_v13, %v111_v19 }
  0xbc   :  { %v360_v22 = vsel %vm112_vm4, 1.0, %v555_v2 }
  0xbd   :  { %v107_v23 = vadd.f32 %v359_v21, %v99_v20 }
  0xbf   :  { %v115_v24 = vadd.f32 %v360_v22, %v107_v23  ;;  %v178_v39 = vpop.permute.xlu1 %177 }
  0xc0   :  { %v186_v40 = vmul.f32 %v363_v38, %v178_v39 }
  0xc1   :  { %v116_v26 = vpack.c.bf16 %v115_v24, %v115_v24 }
  0xc3   :  { %387 = vmatmul.mubr.msk.bf16.vlgmr.msra.gmra.mxu1 %vm125_vm5, %v116_v26 }
  0xc4   :  { %391 = vmatpush3.bf16.msra.mxu1 %v433_v25  ;;  %394 = vmatprep.mubr.msk.bf16.mxu1 %vm558_vm0, %v555_v2 }
  0xc5   :  { %392 = vmatprep.subr.bf16.mxu1 %v555_v2 }
  0xc8   :  { %393 = vmatpush3.bf16.msra.mxu1 %v434_v27 }
 0x183   :  { %v163_v30 = vpop.f32.mrf.mxu1 }
 0x184   :  { %v169_v31 = vpack.c.bf16 %v163_v30, %v163_v30 }
 0x185   :  { %v388_v32 = vpop.f32.mrf.mxu1 }
 0x186   :  { %395 = vmatmul.mubr.msk.bf16.vlgmr.msra.gmra.mxu1 %vm199_vm6, %v169_v31 }
 0x187   :  { %v166_v33 = vpop.f32.mrf.mxu1 }
 0x189   :  { %v389_v34 = vpop.f32.mrf.mxu1 }
 0x246   :  { %v237_v41 = vpop.f32.mrf.mxu1 }
 0x247   :  { %v238_v43 = vadd.f32 %v237_v41, %v186_v40 }
 0x248   :  { %v396_v44 = vpop.f32.mrf.mxu1 }
 0x249   :  { %v250_v45 = vadd.f32 %v367_v42, %v238_v43 }
 0x24a   :  { %v240_v46 = vpop.f32.mrf.mxu1 }
 0x24b   :  { %v251_v47 = vmul.f32 0.01, %v250_v45 }
 0x24c   :  { %v397_v48 = vpop.f32.mrf.mxu1 }
 0x24d   :  { %v252_v49 = vmax.f32 %v250_v45, %v251_v47 }
 0x24f   :  { %v253_v50 = vpack.c.bf16 %v252_v49, %v252_v49 }
 0x251   :  { %407 = vmatmul.mubr.msk.bf16.vlgmr.msra.gmra.mxu0 %vm293_vm7, %v253_v50 }
 0x311   :  { %v331_v52 = vpop.f32.mrf.mxu0 }
 0x312   :  { %v332_v53 = vadd.f32 %v368_v51, %v331_v52 }
 0x313   :  { %v408_v54 = vpop.f32.mrf.mxu0 }
 0x314   :  { %v337_v55 = vmul.f32 0.01, %v332_v53 }
 0x315   :  { %v334_v56 = vpop.f32.mrf.mxu0 }
 0x316   :  { %v338_v57 = vmax.f32 %v332_v53, %v337_v55 }
 0x317   :  { %v409_v58 = vpop.f32.mrf.mxu0 }
 0x318   :  { %339 = vst [vmem:[#allocation10] sm:$0xff] %v338_v57 }
 0x319   :  { %530 = shalt.err (!%p527_p10)
}
 0x31a   :  { %349 = dma.vmem_to_hbm [thread:$0]  %s347_s25, 128, %s658_s7, [#allocation4]  }
 0x31b   :  { %545 = dma.done.wait [#allocation4], 128  }
 0x31c   :  { %546 = vsyncadd [#allocation4], 4294967168 }
 0x31d   :  { %353 = vsyncpa [#allocation3], 1 }
 0x31e   :  { %354 = vsyncpa [#allocation6], 1 }
 0x31f   :  { %355 = vsyncpa [#allocation9], 1 }
 0x320   :  { %356 = vsyncpa [#allocation4], 1 }

</bundles_post_ra>
